<compile_context>
chip_gen: v7x
topology: tpu7x:2x2x1
jax: 0.10.0
libtpu: 0.0.40
codegen_flags: <defaults>
</compile_context>

<pallas_src>
import jax
import jax.numpy as jnp
from jax.experimental import pallas as pl
from jax.experimental.pallas import tpu as pltpu

BN_EPS = 1e-5
INPUT_DIM = 10
LATENT_DIM = 4
H1, H2 = 32, 16          # encoder hidden dims; decoder mirrors them ([16, 32])
LANES = 128


def _round_up(n, m):
    return -(-n // m) * m


# ---------------------------------------------------------------------------
# Packed-slab layouts (computed once in Python; all slices in-kernel are static)
# ---------------------------------------------------------------------------
# Weight slab: each matrix stored [in, out], zero-padded to 128 lanes, stacked
# along sublanes with 8-aligned row starts.
_W_SHAPES = (
    ("w1",  INPUT_DIM,  H1),              # encoder linear 1
    ("w2",  H1,         H2),              # encoder linear 2
    ("wmv", H2,         2 * LATENT_DIM),  # fc_mu | fc_logvar fused
    ("wd1", LATENT_DIM, H2),              # decoder linear 1
    ("wd2", H2,         H1),              # decoder linear 2
    ("wd3", H1,         INPUT_DIM),       # decoder output linear
)
W_LAYOUT = {}
_row = 0
for _name, _nin, _nout in _W_SHAPES:
    W_LAYOUT[_name] = (_row, _nin, _nout)
    _row += _round_up(_nin, 8)
W_ROWS = _round_up(_row, 8)              # = 120

# 1-D param slab: one row per vector, padded to 128 lanes.  Pre-BN linear
# biases (b1, b2, bd1, bd2) are intentionally absent: they cancel exactly under
# the batch-mean subtraction of a training-mode BatchNorm.
_P_SHAPES = (
    ("g1", H1), ("bb1", H1),
    ("g2", H2), ("bb2", H2),
    ("bmv", 2 * LATENT_DIM),
    ("gd1", H2), ("bbd1", H2),
    ("gd2", H1), ("bbd2", H1),
    ("bd3", INPUT_DIM),
)
P_LAYOUT = {name: (i, dim) for i, (name, dim) in enumerate(_P_SHAPES)}
P_ROWS = _round_up(len(_P_SHAPES), 8)    # = 16

OUT_WIDTH = INPUT_DIM + 3 * LATENT_DIM   # recon | mu | log_var | z  (= 22)


# ---------------------------------------------------------------------------
# Kernel
# ---------------------------------------------------------------------------
def _bn_relu(h, gamma, beta):
    """Training-mode BatchNorm1d (batch stats, biased variance) + ReLU.

    gamma is folded into the rsqrt scale; (h - mean) is computed once and reused.
    """
    mean = jnp.mean(h, axis=0, keepdims=True)
    c = h - mean
    var = jnp.mean(c * c, axis=0, keepdims=True)
    scale = gamma * jax.lax.rsqrt(var + BN_EPS)
    return jnp.maximum(c * scale + beta, 0.0)


def vae_kernel(x_ref, eps_ref, w_ref, p_ref, out_ref):
    x = x_ref[...]
    eps = eps_ref[...]
    p = p_ref[...]                       # tiny [16,128] block; slice values below

    def w(name):                         # static view-slice of the weight slab
        r0, nin, nout = W_LAYOUT[name]
        return w_ref[r0:r0 + nin, 0:nout]

    def v(name):                         # static slice of the packed 1-D params
        row, dim = P_LAYOUT[name]
        return p[row:row + 1, 0:dim]

    # ---------------- encoder ----------------
    # (pre-BN linear biases omitted: exact cancellation under batch-mean subtraction)
    h = _bn_relu(jnp.dot(x, w("w1"), preferred_element_type=jnp.float32),
                 v("g1"), v("bb1"))
    h = _bn_relu(jnp.dot(h, w("w2"), preferred_element_type=jnp.float32),
                 v("g2"), v("bb2"))

    # fused fc_mu | fc_logvar: one MXU push, split columns afterwards
    mulv = jnp.dot(h, w("wmv"), preferred_element_type=jnp.float32) + v("bmv")
    mu = mulv[:, :LATENT_DIM]
    log_var = mulv[:, LATENT_DIM:2 * LATENT_DIM]

    # ---------------- reparameterize ----------------
    z = mu + eps * jnp.exp(0.5 * log_var)

    # ---------------- decoder ----------------
    d = _bn_relu(jnp.dot(z, w("wd1"), preferred_element_type=jnp.float32),
                 v("gd1"), v("bbd1"))
    d = _bn_relu(jnp.dot(d, w("wd2"), preferred_element_type=jnp.float32),
                 v("gd2"), v("bbd2"))
    recon = jnp.dot(d, w("wd3"), preferred_element_type=jnp.float32) + v("bd3")

    # single lane-packed output slab: [recon | mu | log_var | z]
    out_ref[...] = jnp.concatenate([recon, mu, log_var, z], axis=1).astype(out_ref.dtype)


# ---------------------------------------------------------------------------
# Parameter init (PyTorch nn.Linear defaults) and one-time host-side packing
# ---------------------------------------------------------------------------
def _linear_params(key, fan_in, fan_out):
    """nn.Linear default init: U(-1/sqrt(fan_in), 1/sqrt(fan_in)); weight stored [in, out]."""
    kw, kb = jax.random.split(key)
    bound = 1.0 / jnp.sqrt(float(fan_in))
    w_ = jax.random.uniform(kw, (fan_in, fan_out), jnp.float32, -bound, bound)
    b_ = jax.random.uniform(kb, (fan_out,), jnp.float32, -bound, bound)
    return w_, b_


def init_params(seed=0):
    keys = jax.random.split(jax.random.PRNGKey(seed), 7)
    p = {}
    p["w1"], p["b1"] = _linear_params(keys[0], INPUT_DIM, H1)     # b1 unused (cancels in BN)
    p["w2"], p["b2"] = _linear_params(keys[1], H1, H2)            # b2 unused (cancels in BN)
    p["wmu"], p["bmu"] = _linear_params(keys[2], H2, LATENT_DIM)
    p["wlv"], p["blv"] = _linear_params(keys[3], H2, LATENT_DIM)
    p["wd1"], p["bd1"] = _linear_params(keys[4], LATENT_DIM, H2)  # bd1 unused (cancels in BN)
    p["wd2"], p["bd2"] = _linear_params(keys[5], H2, H1)          # bd2 unused (cancels in BN)
    p["wd3"], p["bd3"] = _linear_params(keys[6], H1, INPUT_DIM)
    for dim, tag in ((H1, "1"), (H2, "2"), (H2, "d1"), (H1, "d2")):
        p["g" + tag] = jnp.ones((dim,), jnp.float32)
        p["bb" + tag] = jnp.zeros((dim,), jnp.float32)
    return p


def pack_params(p):
    """One-time packing into two lane-padded slabs (cuts ~22 tiny input DMAs to 2)."""
    wmats = dict(p, wmv=jnp.concatenate([p["wmu"], p["wlv"]], axis=1))
    w_slab = jnp.zeros((W_ROWS, LANES), jnp.float32)
    for name, (r0, nin, nout) in W_LAYOUT.items():
        w_slab = w_slab.at[r0:r0 + nin, 0:nout].set(wmats[name])

    vecs = dict(p, bmv=jnp.concatenate([p["bmu"], p["blv"]], axis=0))
    p_slab = jnp.zeros((P_ROWS, LANES), jnp.float32)
    for name, (row, dim) in P_LAYOUT.items():
        p_slab = p_slab.at[row, 0:dim].set(vecs[name])
    return w_slab, p_slab


# ---------------------------------------------------------------------------
# Forward wrapper
# ---------------------------------------------------------------------------
@jax.jit
def minimal_vae_forward(x, eps, w_slab, p_slab):
    batch = x.shape[0]
    vmem = pl.BlockSpec(memory_space=pltpu.MemorySpace.VMEM)
    packed = pl.pallas_call(
        vae_kernel,
        out_shape=jax.ShapeDtypeStruct((batch, OUT_WIDTH), jnp.float32),
        in_specs=[vmem, vmem, vmem, vmem],
        out_specs=vmem,
        compiler_params=pltpu.CompilerParams(vmem_limit_bytes=4 << 20),
    )(x, eps, w_slab, p_slab)
    d0 = INPUT_DIM
    d1 = INPUT_DIM + LATENT_DIM
    d2 = INPUT_DIM + 2 * LATENT_DIM
    return {
        "reconstruction": packed[:, :d0],
        "mu": packed[:, d0:d1],
        "log_var": packed[:, d1:d2],
        "z": packed[:, d2:],
    }


if __name__ == "__main__":
    BATCH = 8

    x = jax.random.normal(jax.random.PRNGKey(0), (BATCH, INPUT_DIM), jnp.float32)
    # deterministic reparameterization noise (module seed = 42)
    eps = jax.random.normal(jax.random.PRNGKey(42), (BATCH, LATENT_DIM), jnp.float32)

    params = init_params(seed=0)
    w_slab, p_slab = pack_params(params)

    out = minimal_vae_forward(x, eps, w_slab, p_slab)
    jax.block_until_ready(out)

    assert out["reconstruction"].shape == (BATCH, INPUT_DIM)
    assert out["mu"].shape == (BATCH, LATENT_DIM)
    assert out["log_var"].shape == (BATCH, LATENT_DIM)
    assert out["z"].shape == (BATCH, LATENT_DIM)

    print("KERNEL_OK")
</pallas_src>

<mosaic_0001>
module attributes {stable_mosaic.version = 11 : i64} {
  func.func @vae_kernel(%arg0: memref<8x10xf32, #tpu.memory_space<vmem>>, %arg1: memref<8x4xf32, #tpu.memory_space<vmem>>, %arg2: memref<120x128xf32, #tpu.memory_space<vmem>>, %arg3: memref<16x128xf32, #tpu.memory_space<vmem>>, %arg4: memref<8x22xf32, #tpu.memory_space<vmem>>) attributes {dimension_semantics = [], scalar_prefetch = 0 : i64, scratch_operands = 0 : i64, tpu.core_type = #tpu.core_type<tc>} {
    %c0 = arith.constant 0 : index
    %c0_0 = arith.constant 0 : index
    %0 = vector.load %arg0[%c0, %c0_0] : memref<8x10xf32, #tpu.memory_space<vmem>>, vector<8x10xf32>
    %c0_1 = arith.constant 0 : index
    %c0_2 = arith.constant 0 : index
    %1 = vector.load %arg1[%c0_1, %c0_2] : memref<8x4xf32, #tpu.memory_space<vmem>>, vector<8x4xf32>
    %c0_3 = arith.constant 0 : index
    %c0_4 = arith.constant 0 : index
    %2 = vector.load %arg3[%c0_3, %c0_4] : memref<16x128xf32, #tpu.memory_space<vmem>>, vector<16x128xf32>
    %c0_5 = arith.constant 0 : index
    %c0_6 = arith.constant 0 : index
    %3 = vector.load %arg2[%c0_5, %c0_6] : memref<120x128xf32, #tpu.memory_space<vmem>>, vector<10x32xf32>
    %cst = arith.constant dense<0.000000e+00> : vector<8x32xf32>
    %4 = tpu.matmul %0, %3, %cst {dimension_numbers = #tpu.dot_dimension_numbers<[1], [0], [0], [1], [0, 0, 1, 1], [], []>} : vector<8x10xf32>, vector<10x32xf32>, vector<8x32xf32> -> vector<8x32xf32>
    %5 = vector.extract_strided_slice %2 {offsets = [0, 0], sizes = [1, 32], strides = [1, 1]} : vector<16x128xf32> to vector<1x32xf32>
    %6 = vector.extract_strided_slice %2 {offsets = [1, 0], sizes = [1, 32], strides = [1, 1]} : vector<16x128xf32> to vector<1x32xf32>
    %cst_7 = arith.constant dense<0.000000e+00> : vector<32xf32>
    %7 = vector.multi_reduction <add>, %4, %cst_7 [0] : vector<8x32xf32> to vector<32xf32>
    %8 = vector.shape_cast %7 : vector<32xf32> to vector<1x32xf32>
    %cst_8 = arith.constant 8.000000e+00 : f32
    %9 = vector.broadcast %cst_8 : f32 to vector<1x32xf32>
    %10 = arith.divf %8, %9 : vector<1x32xf32>
    %11 = vector.broadcast %10 : vector<1x32xf32> to vector<8x32xf32>
    %12 = arith.subf %4, %11 : vector<8x32xf32>
    %13 = arith.mulf %12, %12 : vector<8x32xf32>
    %cst_9 = arith.constant dense<0.000000e+00> : vector<32xf32>
    %14 = vector.multi_reduction <add>, %13, %cst_9 [0] : vector<8x32xf32> to vector<32xf32>
    %15 = vector.shape_cast %14 : vector<32xf32> to vector<1x32xf32>
    %cst_10 = arith.constant 8.000000e+00 : f32
    %16 = vector.broadcast %cst_10 : f32 to vector<1x32xf32>
    %17 = arith.divf %15, %16 : vector<1x32xf32>
    %cst_11 = arith.constant 9.99999974E-6 : f32
    %18 = vector.broadcast %cst_11 : f32 to vector<1x32xf32>
    %19 = arith.addf %17, %18 : vector<1x32xf32>
    %20 = math.rsqrt %19 : vector<1x32xf32>
    %21 = arith.mulf %5, %20 : vector<1x32xf32>
    %22 = vector.broadcast %21 : vector<1x32xf32> to vector<8x32xf32>
    %23 = arith.mulf %12, %22 : vector<8x32xf32>
    %24 = vector.broadcast %6 : vector<1x32xf32> to vector<8x32xf32>
    %25 = arith.addf %23, %24 : vector<8x32xf32>
    %cst_12 = arith.constant 0.000000e+00 : f32
    %26 = vector.broadcast %cst_12 : f32 to vector<8x32xf32>
    %27 = arith.maximumf %25, %26 : vector<8x32xf32>
    %c16 = arith.constant 16 : index
    %c0_13 = arith.constant 0 : index
    %28 = vector.load %arg2[%c16, %c0_13] : memref<120x128xf32, #tpu.memory_space<vmem>>, vector<32x16xf32>
    %cst_14 = arith.constant dense<0.000000e+00> : vector<8x16xf32>
    %29 = tpu.matmul %27, %28, %cst_14 {dimension_numbers = #tpu.dot_dimension_numbers<[1], [0], [0], [1], [0, 0, 1, 1], [], []>} : vector<8x32xf32>, vector<32x16xf32>, vector<8x16xf32> -> vector<8x16xf32>
    %30 = vector.extract_strided_slice %2 {offsets = [2, 0], sizes = [1, 16], strides = [1, 1]} : vector<16x128xf32> to vector<1x16xf32>
    %31 = vector.extract_strided_slice %2 {offsets = [3, 0], sizes = [1, 16], strides = [1, 1]} : vector<16x128xf32> to vector<1x16xf32>
    %cst_15 = arith.constant dense<0.000000e+00> : vector<16xf32>
    %32 = vector.multi_reduction <add>, %29, %cst_15 [0] : vector<8x16xf32> to vector<16xf32>
    %33 = vector.shape_cast %32 : vector<16xf32> to vector<1x16xf32>
    %cst_16 = arith.constant 8.000000e+00 : f32
    %34 = vector.broadcast %cst_16 : f32 to vector<1x16xf32>
    %35 = arith.divf %33, %34 : vector<1x16xf32>
    %36 = vector.broadcast %35 : vector<1x16xf32> to vector<8x16xf32>
    %37 = arith.subf %29, %36 : vector<8x16xf32>
    %38 = arith.mulf %37, %37 : vector<8x16xf32>
    %cst_17 = arith.constant dense<0.000000e+00> : vector<16xf32>
    %39 = vector.multi_reduction <add>, %38, %cst_17 [0] : vector<8x16xf32> to vector<16xf32>
    %40 = vector.shape_cast %39 : vector<16xf32> to vector<1x16xf32>
    %cst_18 = arith.constant 8.000000e+00 : f32
    %41 = vector.broadcast %cst_18 : f32 to vector<1x16xf32>
    %42 = arith.divf %40, %41 : vector<1x16xf32>
    %cst_19 = arith.constant 9.99999974E-6 : f32
    %43 = vector.broadcast %cst_19 : f32 to vector<1x16xf32>
    %44 = arith.addf %42, %43 : vector<1x16xf32>
    %45 = math.rsqrt %44 : vector<1x16xf32>
    %46 = arith.mulf %30, %45 : vector<1x16xf32>
    %47 = vector.broadcast %46 : vector<1x16xf32> to vector<8x16xf32>
    %48 = arith.mulf %37, %47 : vector<8x16xf32>
    %49 = vector.broadcast %31 : vector<1x16xf32> to vector<8x16xf32>
    %50 = arith.addf %48, %49 : vector<8x16xf32>
    %cst_20 = arith.constant 0.000000e+00 : f32
    %51 = vector.broadcast %cst_20 : f32 to vector<8x16xf32>
    %52 = arith.maximumf %50, %51 : vector<8x16xf32>
    %c48 = arith.constant 48 : index
    %c0_21 = arith.constant 0 : index
    %53 = vector.load %arg2[%c48, %c0_21] : memref<120x128xf32, #tpu.memory_space<vmem>>, vector<16x8xf32>
    %cst_22 = arith.constant dense<0.000000e+00> : vector<8x8xf32>
    %54 = tpu.matmul %52, %53, %cst_22 {dimension_numbers = #tpu.dot_dimension_numbers<[1], [0], [0], [1], [0, 0, 1, 1], [], []>} : vector<8x16xf32>, vector<16x8xf32>, vector<8x8xf32> -> vector<8x8xf32>
    %55 = vector.extract_strided_slice %2 {offsets = [4, 0], sizes = [1, 8], strides = [1, 1]} : vector<16x128xf32> to vector<1x8xf32>
    %56 = vector.broadcast %55 : vector<1x8xf32> to vector<8x8xf32>
    %57 = arith.addf %54, %56 : vector<8x8xf32>
    %58 = vector.extract_strided_slice %57 {offsets = [0, 0], sizes = [8, 4], strides = [1, 1]} : vector<8x8xf32> to vector<8x4xf32>
    %59 = vector.extract_strided_slice %57 {offsets = [0, 4], sizes = [8, 4], strides = [1, 1]} : vector<8x8xf32> to vector<8x4xf32>
    %cst_23 = arith.constant 5.000000e-01 : f32
    %60 = vector.broadcast %cst_23 : f32 to vector<8x4xf32>
    %61 = arith.mulf %60, %59 : vector<8x4xf32>
    %62 = math.exp %61 : vector<8x4xf32>
    %63 = arith.mulf %1, %62 : vector<8x4xf32>
    %64 = arith.addf %58, %63 : vector<8x4xf32>
    %c64 = arith.constant 64 : index
    %c0_24 = arith.constant 0 : index
    %65 = vector.load %arg2[%c64, %c0_24] : memref<120x128xf32, #tpu.memory_space<vmem>>, vector<4x16xf32>
    %cst_25 = arith.constant dense<0.000000e+00> : vector<8x16xf32>
    %66 = tpu.matmul %64, %65, %cst_25 {dimension_numbers = #tpu.dot_dimension_numbers<[1], [0], [0], [1], [0, 0, 1, 1], [], []>} : vector<8x4xf32>, vector<4x16xf32>, vector<8x16xf32> -> vector<8x16xf32>
    %67 = vector.extract_strided_slice %2 {offsets = [5, 0], sizes = [1, 16], strides = [1, 1]} : vector<16x128xf32> to vector<1x16xf32>
    %68 = vector.extract_strided_slice %2 {offsets = [6, 0], sizes = [1, 16], strides = [1, 1]} : vector<16x128xf32> to vector<1x16xf32>
    %cst_26 = arith.constant dense<0.000000e+00> : vector<16xf32>
    %69 = vector.multi_reduction <add>, %66, %cst_26 [0] : vector<8x16xf32> to vector<16xf32>
    %70 = vector.shape_cast %69 : vector<16xf32> to vector<1x16xf32>
    %cst_27 = arith.constant 8.000000e+00 : f32
    %71 = vector.broadcast %cst_27 : f32 to vector<1x16xf32>
    %72 = arith.divf %70, %71 : vector<1x16xf32>
    %73 = vector.broadcast %72 : vector<1x16xf32> to vector<8x16xf32>
    %74 = arith.subf %66, %73 : vector<8x16xf32>
    %75 = arith.mulf %74, %74 : vector<8x16xf32>
    %cst_28 = arith.constant dense<0.000000e+00> : vector<16xf32>
    %76 = vector.multi_reduction <add>, %75, %cst_28 [0] : vector<8x16xf32> to vector<16xf32>
    %77 = vector.shape_cast %76 : vector<16xf32> to vector<1x16xf32>
    %cst_29 = arith.constant 8.000000e+00 : f32
    %78 = vector.broadcast %cst_29 : f32 to vector<1x16xf32>
    %79 = arith.divf %77, %78 : vector<1x16xf32>
    %cst_30 = arith.constant 9.99999974E-6 : f32
    %80 = vector.broadcast %cst_30 : f32 to vector<1x16xf32>
    %81 = arith.addf %79, %80 : vector<1x16xf32>
    %82 = math.rsqrt %81 : vector<1x16xf32>
    %83 = arith.mulf %67, %82 : vector<1x16xf32>
    %84 = vector.broadcast %83 : vector<1x16xf32> to vector<8x16xf32>
    %85 = arith.mulf %74, %84 : vector<8x16xf32>
    %86 = vector.broadcast %68 : vector<1x16xf32> to vector<8x16xf32>
    %87 = arith.addf %85, %86 : vector<8x16xf32>
    %cst_31 = arith.constant 0.000000e+00 : f32
    %88 = vector.broadcast %cst_31 : f32 to vector<8x16xf32>
    %89 = arith.maximumf %87, %88 : vector<8x16xf32>
    %c72 = arith.constant 72 : index
    %c0_32 = arith.constant 0 : index
    %90 = vector.load %arg2[%c72, %c0_32] : memref<120x128xf32, #tpu.memory_space<vmem>>, vector<16x32xf32>
    %cst_33 = arith.constant dense<0.000000e+00> : vector<8x32xf32>
    %91 = tpu.matmul %89, %90, %cst_33 {dimension_numbers = #tpu.dot_dimension_numbers<[1], [0], [0], [1], [0, 0, 1, 1], [], []>} : vector<8x16xf32>, vector<16x32xf32>, vector<8x32xf32> -> vector<8x32xf32>
    %92 = vector.extract_strided_slice %2 {offsets = [7, 0], sizes = [1, 32], strides = [1, 1]} : vector<16x128xf32> to vector<1x32xf32>
    %93 = vector.extract_strided_slice %2 {offsets = [8, 0], sizes = [1, 32], strides = [1, 1]} : vector<16x128xf32> to vector<1x32xf32>
    %cst_34 = arith.constant dense<0.000000e+00> : vector<32xf32>
    %94 = vector.multi_reduction <add>, %91, %cst_34 [0] : vector<8x32xf32> to vector<32xf32>
    %95 = vector.shape_cast %94 : vector<32xf32> to vector<1x32xf32>
    %cst_35 = arith.constant 8.000000e+00 : f32
    %96 = vector.broadcast %cst_35 : f32 to vector<1x32xf32>
    %97 = arith.divf %95, %96 : vector<1x32xf32>
    %98 = vector.broadcast %97 : vector<1x32xf32> to vector<8x32xf32>
    %99 = arith.subf %91, %98 : vector<8x32xf32>
    %100 = arith.mulf %99, %99 : vector<8x32xf32>
    %cst_36 = arith.constant dense<0.000000e+00> : vector<32xf32>
    %101 = vector.multi_reduction <add>, %100, %cst_36 [0] : vector<8x32xf32> to vector<32xf32>
    %102 = vector.shape_cast %101 : vector<32xf32> to vector<1x32xf32>
    %cst_37 = arith.constant 8.000000e+00 : f32
    %103 = vector.broadcast %cst_37 : f32 to vector<1x32xf32>
    %104 = arith.divf %102, %103 : vector<1x32xf32>
    %cst_38 = arith.constant 9.99999974E-6 : f32
    %105 = vector.broadcast %cst_38 : f32 to vector<1x32xf32>
    %106 = arith.addf %104, %105 : vector<1x32xf32>
    %107 = math.rsqrt %106 : vector<1x32xf32>
    %108 = arith.mulf %92, %107 : vector<1x32xf32>
    %109 = vector.broadcast %108 : vector<1x32xf32> to vector<8x32xf32>
    %110 = arith.mulf %99, %109 : vector<8x32xf32>
    %111 = vector.broadcast %93 : vector<1x32xf32> to vector<8x32xf32>
    %112 = arith.addf %110, %111 : vector<8x32xf32>
    %cst_39 = arith.constant 0.000000e+00 : f32
    %113 = vector.broadcast %cst_39 : f32 to vector<8x32xf32>
    %114 = arith.maximumf %112, %113 : vector<8x32xf32>
    %c88 = arith.constant 88 : index
    %c0_40 = arith.constant 0 : index
    %115 = vector.load %arg2[%c88, %c0_40] : memref<120x128xf32, #tpu.memory_space<vmem>>, vector<32x10xf32>
    %cst_41 = arith.constant dense<0.000000e+00> : vector<8x10xf32>
    %116 = tpu.matmul %114, %115, %cst_41 {dimension_numbers = #tpu.dot_dimension_numbers<[1], [0], [0], [1], [0, 0, 1, 1], [], []>} : vector<8x32xf32>, vector<32x10xf32>, vector<8x10xf32> -> vector<8x10xf32>
    %117 = vector.extract_strided_slice %2 {offsets = [9, 0], sizes = [1, 10], strides = [1, 1]} : vector<16x128xf32> to vector<1x10xf32>
    %118 = vector.broadcast %117 : vector<1x10xf32> to vector<8x10xf32>
    %119 = arith.addf %116, %118 : vector<8x10xf32>
    %120 = tpu.concatenate %119, %58, %59, %64 in 1 : vector<8x10xf32>, vector<8x4xf32>, vector<8x4xf32>, vector<8x4xf32> -> vector<8x22xf32>
    %c0_42 = arith.constant 0 : index
    %c0_43 = arith.constant 0 : index
    %121 = vector.load %arg4[%c0_42, %c0_43] : memref<8x22xf32, #tpu.memory_space<vmem>>, vector<8x22xf32>
    tpu.vector_store %arg4[%c0_42, %c0_43], %120 {strides = array<i32>} : memref<8x22xf32, #tpu.memory_space<vmem>>, vector<8x22xf32>,
    return
  }
}

</mosaic_0001>

<bundles_post_ra>
// kernel: minimal_vae_forward.1
= control target key start
LH: loop header
LB: loop body
LE: loop exit
PB: predicated region body
PF: predicated region fallthrough
CT: control target
= control target key end

     0   :  { %9 = vsyncpa [#allocation3], 0  ;;  %s987_s0 = inlined_call_operand.hbm [shape: f32[8,10], index: 0, kind: input, shape index: {}]   ;;  %s988_s1 = inlined_call_operand.vmem [shape: f32[8,4], index: 1, kind: input, shape index: {}]   ;;  %s989_s2 = inlined_call_operand.hbm [shape: f32[120,128], index: 2, kind: input, shape index: {}]   ;;  %s990_s3 = inlined_call_operand.vmem [shape: f32[16,128], index: 3, kind: input, shape index: {}]   ;;  %s991_s4 = inlined_call_operand.vmem [shape: f32[8,22], index: 4, kind: output, shape index: {}]  }
   0x1   :  { %10 = vsyncpa [#allocation5], 0  ;;  %s846_s15 = smov [#allocation2]   ;;  %s847_s17 = smov [#allocation4]  }
   0x2   :  { %s17_s16 = sshll.u32 %s846_s15, 4  ;;  %s28_s18 = sshll.u32 %s847_s17, 4  ;;  %s18_s16 = int_to_ptr.vmem [resolvable:$true] %s17_s16  ;;  %s882_s18 = int_to_ptr.vmem [resolvable:$true] %s28_s18 }
   0x3   :  { %s798_s21 = scalar_lea.hbm %s987_s0, 128 }
   0x4   :  { %p799_p0 = scmp.ne.s32.totalorder %s987_s0, %s798_s21  ;;  %p802_p1 = scmp.lt.u32.totalorder %s798_s21, %s987_s0 }
   0x6   :  { %p804_p2 = pnand %p802_p1, %p799_p0 }
   0x8   :  { %807 = shalt.err (!%p804_p2)
}
   0x9   :  { %s808_s26 = scalar_lea.vmem %s18_s16, 128  ;;  %p813_p4 = scmp.lt.s32.totalorder %s18_s16, %s18_s16 }
   0xa   :  { %p809_p3 = scmp.ne.s32.totalorder %s18_s16, %s808_s26  ;;  %p814_p5 = scmp.lt.s32.totalorder %s808_s26, %s808_s26 }
   0xc   :  { %p815_p6 = por %p814_p5, %p813_p4 }
   0xe   :  { %p816_p7 = pnand %p815_p6, %p809_p3 }
  0x10   :  { %819 = shalt.err (!%p816_p7)
}
  0x11   :  { %20 = dma.hbm_to_vmem [thread:$0]  %s987_s0, 128, %s18_s16, [#allocation3]  }
  0x12   :  { %s820_s5 = scalar_lea.hbm %s989_s2, 1920 }
  0x13   :  { %p821_p8 = scmp.ne.s32.totalorder %s989_s2, %s820_s5  ;;  %p824_p9 = scmp.lt.u32.totalorder %s820_s5, %s989_s2 }
  0x15   :  { %p826_p10 = pnand %p824_p9, %p821_p8 }
  0x17   :  { %829 = shalt.err (!%p826_p10)
}
  0x18   :  { %s830_s10 = scalar_lea.vmem %s882_s18, 1920  ;;  %p835_p12 = scmp.lt.s32.totalorder %s882_s18, %s882_s18 }
  0x19   :  { %p831_p11 = scmp.ne.s32.totalorder %s882_s18, %s830_s10  ;;  %p836_p13 = scmp.lt.s32.totalorder %s830_s10, %s830_s10 }
  0x1b   :  { %p837_p0 = por %p836_p13, %p835_p12 }
  0x1d   :  { %p838_p1 = pnand %p837_p0, %p831_p11 }
  0x1f   :  { %841 = shalt.err (!%p838_p1)
}
  0x20   :  { %s848_s0 = smov 128   ;;  %s849_s11 = smov 8  }
  0x21   :  { %34 = dma.hbm_to_vmem [thread:$0]  %s989_s2, 1920, %s882_s18, [#allocation5], %s848_s0, %s848_s0, %s849_s11  }
  0x22   :  { %842 = dma.done.wait [#allocation3], 128  }
  0x23   :  { %843 = vsyncadd [#allocation3], 4294967168 }
  0x24   :  { %844 = dma.done.wait [#allocation5], 1920  }
  0x25   :  { %845 = vsyncadd [#allocation5], 4294965376  ;;  %v850_v0 = vmov 0.0|0.0   ;;  %vm851_vm0 = vmmov 0   ;;  %v852_v1 = vmov 0.0   ;;  %vm53_vm1 = vcmask 1041408  }
  0x26   :  { %755 = vmatprep.subr.bf16.mxu1 %v850_v0  ;;  %765 = vmatprep.subr.bf16.mxu0 %v850_v0  ;;  %v47_v2 = vld [vmem:[#allocation4] sm:$0xff]  ;;  %v48_v3 = vld [vmem:[#allocation4 + $0x8] sm:$0x3]  ;;  %vm853_vm2 = vmmov 1   ;;  %v43_v5 = vld [vmem:[#allocation2] sm:$0xff]  ;;  %vm49_vm4 = vcmask 80896   ;;  %v150_v33 = vlaneseq }
  0x27   :  { %711 = vmatprep.mubr.msk.f32.mxu1 %vm851_vm0, %v852_v1  ;;  %729 = vmatprep.mubr.msk.f32.mxu0 %vm851_vm0, %v852_v1  ;;  %vm757_vm3 = vmpackc.low %vm53_vm1, %vm853_vm2  ;;  %v756_v4 = vpack.c.bf16 %v48_v3, %v47_v2  ;;  %v161_v6 = vld [vmem:[#allocation4 + $0x10] sm:$0xff]  ;;  %v162_v7 = vld [vmem:[#allocation4 + $0x18] sm:$0xff]  ;;  %vm127_vm5 = vcmask 261120   ;;  %vm238_vm6 = vcmask 130048   ;;  %vm364_vm7 = vcmask 1043456   ;;  %s854_s15 = smov 124  }
  0x28   :  { %v760_v8 = vpack.c.bf16 %v162_v7, %v161_v6  ;;  %v163_v9 = vld [vmem:[#allocation4 + $0x20] sm:$0xff]  ;;  %v164_v10 = vld [vmem:[#allocation4 + $0x28] sm:$0xff]  ;;  %v927_v34 = vshrl.u32 %v150_v33, 7  ;;  %v932_v35 = vld [vmem:[%s990_s3] sm:$0xff]  ;;  %s855_s16 = smov 10   ;;  %vm360_vm8 = vcmask 31744  }
  0x29   :  { %758 = vmatpush3.bf16.msk.msra.mxu1 %vm757_vm3, %v756_v4  ;;  %v763_v11 = vpack.c.bf16 %v164_v10, %v163_v9  ;;  %v271_v45 = vld [vmem:[#allocation4 + $0x30] sm:$0xff]  ;;  %v272_v46 = vld [vmem:[#allocation4 + $0x38] sm:$0xff]  ;;  %s856_s19 = smov 18   ;;  %vm666_vm9 = vcmask 113664   ;;  %vm668_vm10 = vcmask 146432   ;;  %vm670_vm11 = vcmask 179200  }
  0x2a   :  { %759 = vmatprep.subr.bf16.mxu1 %v850_v0  ;;  %v152_v36 = vsub.s32 0, %v927_v34  ;;  %v157_v37 = vsub.s32 1, %v927_v34  ;;  %v766_v47 = vpack.c.bf16 %v272_v46, %v271_v45  ;;  %v262_v7 = vsub.s32 2, %v927_v34 }
  0x2c   :  { %712 = vmatmul.mubr.msk.f32.vlgmr.msra.gmra.mrb[0].mxu1 %vm49_vm4, %v43_v5  ;;  %v158_v41 = vrot.slane %v932_v35, %v157_v37  ;;  %767 = vmatpush3.bf16.msra.mxu0 %v766_v47 }
  0x2d   :  { %722 = vmatprep.mubr.msk.f32.mxu1 %vm851_vm0, %v852_v1  ;;  %761 = vmatpush3.bf16.msra.mxu1 %v760_v8  ;;  %v267_v8 = vsub.s32 3, %v927_v34 }
  0x2e   :  { %762 = vmatprep.subr.bf16.mxu1 %v850_v0  ;;  %732 = vmatprep.subr.mxu0 %v852_v1 }
  0x31   :  { %764 = vmatpush3.bf16.msra.mxu1 %v763_v11 }
  0x32   :  { %768 = vmatprep.subr.bf16.mxu1 %v850_v0 }
  0xff   :  { %v123_v12 = vpop.f32.mrb[0].mxu1 }
 0x100   :  { %v128_v13 = vsel %vm127_vm5, %v123_v12, 0.0  ;;  %v713_v14 = vpop.f32.mrb[1].mxu1 }
 0x101   :  { %v129_v15 = vrot.slane %v128_v13, 4 }
 0x103   :  { %v130_v16 = vadd.f32 %v129_v15, %v128_v13 }
 0x105   :  { %v131_v17 = vrot.slane %v130_v16, 2 }
 0x107   :  { %v132_v18 = vadd.f32 %v131_v17, %v130_v16  ;;  %v275_v16 = vsub.s32 4, %v927_v34 }
 0x109   :  { %v133_v19 = vrot.slane %v132_v18, 1  ;;  %v276_v17 = vrot.slane %v932_v35, %v275_v16 }
 0x10b   :  { %v134_v20 = vadd.f32 %v133_v19, %v132_v18 }
 0x10d   :  { %v136_v21 = vmul.f32 0.125, %v134_v20 }
 0x10f   :  { %v137_v22 = vsub.f32 %v123_v12, %v136_v21  ;;  %v268_v12 = vrot.slane %v932_v35, %v267_v8 }
 0x111   :  { %v138_v23 = vmul.f32 %v137_v22, %v137_v22 }
 0x113   :  { %v139_v24 = vsel %vm127_vm5, %v138_v23, 0.0  ;;  %v359_v23 = vld [vmem:[#allocation4 + $0x40] sm:$0xf] }
 0x114   :  { %v140_v25 = vrot.slane %v139_v24, 4 }
 0x116   :  { %v141_v26 = vadd.f32 %v140_v25, %v139_v24  ;;  %v44_v25 = vld [vmem:[%s988_s1] sm:$0xff] }
 0x118   :  { %v142_v27 = vrot.slane %v141_v26, 2 }
 0x11a   :  { %v143_v28 = vadd.f32 %v142_v27, %v141_v26 }
 0x11c   :  { %v144_v29 = vrot.slane %v143_v28, 1 }
 0x11e   :  { %v145_v30 = vadd.f32 %v144_v29, %v143_v28  ;;  %v470_v29 = vld [vmem:[#allocation4 + $0x48] sm:$0xff] }
 0x120   :  { %v146_v31 = vmul.f32 0.125, %v145_v30  ;;  %v471_v30 = vld [vmem:[#allocation4 + $0x50] sm:$0xff] }
 0x122   :  { %v147_v32 = vadd.f32 1e-05, %v146_v31  ;;  %v769_v31 = vpack.c.bf16 %v471_v30, %v470_v29  ;;  %v568_v29 = vsub.s32 7, %v927_v34 }
 0x124   :  { %788 = vrsqrt.f32 %v147_v32 }
 0x12e   :  { %v789_v38 = vpop.eup %788 }
 0x12f   :  { %v149_v39 = vmul.f32 %v789_v38, %v932_v35 }
 0x131   :  { %v153_v40 = vrot.slane %v149_v39, %v152_v36 }
 0x133   :  { %v154_v42 = vmul.f32 %v153_v40, %v137_v22 }
 0x135   :  { %v159_v43 = vadd.f32 %v158_v41, %v154_v42 }
 0x137   :  { %v160_v44 = vmax.f32 %v159_v43, 0.0 }
 0x139   :  { %723 = vmatmul.mubr.msk.f32.vlgmr.msra.gmra.mrb[2].mxu1 %vm127_vm5, %v160_v44 }
 0x13a   :  { %741 = vmatprep.mubr.msk.f32.mxu1 %vm851_vm0, %v852_v1  ;;  %770 = vmatpush3.bf16.msra.mxu1 %v769_v31  ;;  %v46_v31 = vld [vmem:[%s990_s3 + $0x8] sm:$0xff] }
 0x20c   :  { %v234_v48 = vpop.f32.mrb[2].mxu1 }
 0x20d   :  { %v239_v49 = vsel %vm238_vm6, %v234_v48, 0.0  ;;  %v724_v50 = vpop.f32.mrb[3].mxu1 }
 0x20e   :  { %v240_v51 = vrot.slane %v239_v49, 4 }
 0x210   :  { %v241_v52 = vadd.f32 %v240_v51, %v239_v49 }
 0x212   :  { %v242_v53 = vrot.slane %v241_v52, 2 }
 0x214   :  { %v243_v54 = vadd.f32 %v242_v53, %v241_v52 }
 0x216   :  { %v244_v55 = vrot.slane %v243_v54, 1 }
 0x218   :  { %v245_v56 = vadd.f32 %v244_v55, %v243_v54 }
 0x21a   :  { %v246_v57 = vmul.f32 0.125, %v245_v56  ;;  %v461_v56 = vsub.s32 5, %v927_v34 }
 0x21c   :  { %v247_v58 = vsub.f32 %v234_v48, %v246_v57  ;;  %v466_v57 = vsub.s32 6, %v927_v34 }
 0x21e   :  { %v248_v59 = vmul.f32 %v247_v58, %v247_v58 }
 0x220   :  { %v249_v60 = vsel %vm238_vm6, %v248_v59, 0.0 }
 0x221   :  { %v250_v61 = vrot.slane %v249_v60, 4 }
 0x223   :  { %v251_v62 = vadd.f32 %v250_v61, %v249_v60  ;;  %v467_v61 = vrot.slane %v932_v35, %v466_v57 }
 0x225   :  { %v252_v63 = vrot.slane %v251_v62, 2 }
 0x227   :  { %v253_v2 = vadd.f32 %v252_v63, %v251_v62 }
 0x229   :  { %v254_v3 = vrot.slane %v253_v2, 1 }
 0x22b   :  { %v255_v4 = vadd.f32 %v254_v3, %v253_v2  ;;  %v577_v3 = vld [vmem:[#allocation4 + $0x58] sm:$0xff] }
 0x22d   :  { %v256_v5 = vmul.f32 0.125, %v255_v4  ;;  %v578_v4 = vld [vmem:[#allocation4 + $0x60] sm:$0xff] }
 0x22f   :  { %v257_v6 = vadd.f32 1e-05, %v256_v5  ;;  %v772_v5 = vpack.c.bf16 %v578_v4, %v577_v3 }
 0x231   :  { %790 = vrsqrt.f32 %v257_v6  ;;  %v579_v6 = vld [vmem:[#allocation4 + $0x68] sm:$0xff] }
 0x23b   :  { %v791_v9 = vpop.eup %790 }
 0x23c   :  { %v259_v10 = vmul.f32 %v791_v9, %v932_v35 }
 0x23e   :  { %v263_v11 = vrot.slane %v259_v10, %v262_v7  ;;  %v580_v7 = vld [vmem:[#allocation4 + $0x70] sm:$0xff] }
 0x23f   :  { %v775_v8 = vpack.c.bf16 %v580_v7, %v579_v6 }
 0x240   :  { %v264_v13 = vmul.f32 %v263_v11, %v247_v58 }
 0x242   :  { %v269_v14 = vadd.f32 %v268_v12, %v264_v13 }
 0x244   :  { %v270_v15 = vmax.f32 %v269_v14, 0.0 }
 0x246   :  { %730 = vmatmul.mubr.msk.f32.vlgmr.msra.gmra.mrb[0].mxu0 %vm238_vm6, %v270_v15 }
 0x247   :  { %734 = vmatprep.mubr.msk.f32.mxu0 %vm851_vm0, %v852_v1  ;;  %733 = vmatpush3.msk.msra.mxu0 %vm364_vm7, %v359_v23 }
 0x248   :  { %771 = vmatprep.subr.bf16.mxu0 %v850_v0 }
 0x319   :  { %v346_v18 = vpop.f32.mrb[0].mxu0 }
 0x31a   :  { %v347_v19 = vadd.f32 %v346_v18, %v276_v17  ;;  %v731_v20 = vpop.f32.mrb[1].mxu0 }
 0x31c   :  { %v350_v21 = vmul.f32 0.5, %v347_v19 }
 0x31e   :  { %v351_v22 = vmul.f32 1.442695, %v350_v21 }
 0x320   :  { %792 = vpow2.f32 %v351_v22 }
 0x32a   :  { %v793_v24 = vpop.eup %792 }
 0x32b   :  { %354 = vrot.lane.b32.xlu0 %v793_v24, %s854_s15 }
 0x32f   :  { %659 = vrot.lane.b32.xlu0 %v347_v19, %s855_s16 }
 0x39d   :  { %v355_v26 = vpop.permute.xlu0 %354 }
 0x39e   :  { %v357_v27 = vmul.f32 %v355_v26, %v44_v25 }
 0x3a0   :  { %v358_v28 = vadd.f32 %v357_v27, %v347_v19 }
 0x3a2   :  { %662 = vrot.lane.b32.xlu1 %v358_v28, %s856_s19  ;;  %735 = vmatmul.mubr.msk.f32.vlgmr.msra.gmra.mrb[2].mxu0 %vm360_vm8, %v358_v28 }
 0x3a3   :  { %752 = vmatprep.mubr.msk.f32.mxu0 %vm851_vm0, %v852_v1  ;;  %773 = vmatpush3.bf16.msra.mxu0 %v772_v5 }
 0x3a4   :  { %774 = vmatprep.subr.bf16.mxu0 %v850_v0 }
 0x3a7   :  { %776 = vmatpush3.bf16.msra.mxu0 %v775_v8 }
 0x475   :  { %v434_v32 = vpop.f32.mrb[2].mxu0 }
 0x476   :  { %v438_v33 = vsel %vm238_vm6, %v434_v32, 0.0  ;;  %v736_v38 = vpop.f32.mrb[3].mxu0 }
 0x477   :  { %v439_v39 = vrot.slane %v438_v33, 4  ;;  %v574_v38 = vrot.slane %v46_v31, %v152_v36 }
 0x479   :  { %v440_v40 = vadd.f32 %v439_v39, %v438_v33 }
 0x47b   :  { %v441_v41 = vrot.slane %v440_v40, 2 }
 0x47d   :  { %v442_v42 = vadd.f32 %v441_v41, %v440_v40 }
 0x47f   :  { %v443_v43 = vrot.slane %v442_v42, 1 }
 0x481   :  { %v444_v44 = vadd.f32 %v443_v43, %v442_v42  ;;  %v584_v42 = vrot.slane %v46_v31, %v157_v37 }
 0x483   :  { %v445_v45 = vmul.f32 0.125, %v444_v44 }
 0x485   :  { %v446_v46 = vsub.f32 %v434_v32, %v445_v45 }
 0x487   :  { %v447_v47 = vmul.f32 %v446_v46, %v446_v46 }
 0x489   :  { %v448_v48 = vsel %vm238_vm6, %v447_v47, 0.0  ;;  %v663_v47 = vpop.permute.xlu1 %662 }
 0x48a   :  { %v449_v1 = vrot.slane %v448_v48, 4 }
 0x48c   :  { %v450_v49 = vadd.f32 %v449_v1, %v448_v48 }
 0x48e   :  { %v451_v50 = vrot.slane %v450_v49, 2 }
 0x490   :  { %v452_v51 = vadd.f32 %v451_v50, %v450_v49 }
 0x492   :  { %v453_v52 = vrot.slane %v452_v51, 1 }
 0x494   :  { %v454_v53 = vadd.f32 %v453_v52, %v452_v51 }
 0x496   :  { %v455_v54 = vmul.f32 0.125, %v454_v53 }
 0x498   :  { %v456_v55 = vadd.f32 1e-05, %v455_v54 }
 0x49a   :  { %794 = vrsqrt.f32 %v456_v55 }
 0x4a4   :  { %v795_v58 = vpop.eup %794 }
 0x4a5   :  { %v458_v59 = vmul.f32 %v795_v58, %v932_v35 }
 0x4a7   :  { %v462_v60 = vrot.slane %v458_v59, %v461_v56 }
 0x4a9   :  { %v463_v62 = vmul.f32 %v462_v60, %v446_v46  ;;  %v660_v46 = vpop.permute.xlu0 %659 }
 0x4ab   :  { %v468_v63 = vadd.f32 %v467_v61, %v463_v62 }
 0x4ad   :  { %v469_v2 = vmax.f32 %v468_v63, 0.0 }
 0x4af   :  { %742 = vmatmul.mubr.msk.f32.vlgmr.msra.gmra.mrb[4].mxu1 %vm238_vm6, %v469_v2 }
 0x582   :  { %v541_v9 = vpop.f32.mrb[4].mxu1 }
 0x583   :  { %v545_v10 = vsel %vm127_vm5, %v541_v9, 0.0  ;;  %v743_v11 = vpop.f32.mrb[5].mxu1 }
 0x584   :  { %v546_v12 = vrot.slane %v545_v10, 4 }
 0x586   :  { %v547_v13 = vadd.f32 %v546_v12, %v545_v10 }
 0x588   :  { %v548_v14 = vrot.slane %v547_v13, 2 }
 0x58a   :  { %v549_v15 = vadd.f32 %v548_v14, %v547_v13 }
 0x58c   :  { %v550_v16 = vrot.slane %v549_v15, 1 }
 0x58e   :  { %v551_v17 = vadd.f32 %v550_v16, %v549_v15 }
 0x590   :  { %v552_v18 = vmul.f32 0.125, %v551_v17 }
 0x592   :  { %v553_v19 = vsub.f32 %v541_v9, %v552_v18 }
 0x594   :  { %v554_v20 = vmul.f32 %v553_v19, %v553_v19 }
 0x596   :  { %v555_v21 = vsel %vm127_vm5, %v554_v20, 0.0 }
 0x597   :  { %v556_v0 = vrot.slane %v555_v21, 4 }
 0x599   :  { %v557_v22 = vadd.f32 %v556_v0, %v555_v21 }
 0x59b   :  { %v558_v23 = vrot.slane %v557_v22, 2 }
 0x59d   :  { %v559_v24 = vadd.f32 %v558_v23, %v557_v22 }
 0x59f   :  { %v560_v25 = vrot.slane %v559_v24, 1 }
 0x5a1   :  { %v561_v26 = vadd.f32 %v560_v25, %v559_v24 }
 0x5a3   :  { %v562_v27 = vmul.f32 0.125, %v561_v26 }
 0x5a5   :  { %v563_v28 = vadd.f32 1e-05, %v562_v27 }
 0x5a7   :  { %796 = vrsqrt.f32 %v563_v28 }
 0x5b1   :  { %v797_v30 = vpop.eup %796 }
 0x5b2   :  { %v565_v32 = vmul.f32 %v797_v30, %v932_v35 }
 0x5b4   :  { %v569_v33 = vrot.slane %v565_v32, %v568_v29 }
 0x5b6   :  { %v570_v39 = vmul.f32 %v569_v33, %v553_v19 }
 0x5b8   :  { %v575_v40 = vadd.f32 %v574_v38, %v570_v39 }
 0x5ba   :  { %v576_v41 = vmax.f32 %v575_v40, 0.0 }
 0x5bc   :  { %753 = vmatmul.mubr.msk.f32.vlgmr.msra.gmra.mrb[4].mxu0 %vm127_vm5, %v576_v41 }
 0x68f   :  { %v654_v43 = vpop.f32.mrb[4].mxu0 }
 0x690   :  { %v655_v44 = vadd.f32 %v654_v43, %v584_v42  ;;  %v754_v45 = vpop.f32.mrb[5].mxu0 }
 0x692   :  { %v665_v35 = vsel %vm49_vm4, %v655_v44, %v660_v46 }
 0x693   :  { %v667_v48 = vsel %vm666_vm9, %v665_v35, %v660_v46 }
 0x694   :  { %v669_v36 = vsel %vm668_vm10, %v667_v48, %v663_v47 }
 0x695   :  { %671 = vst.msk [vmem:[%s991_s4] sm:$0xff] %vm670_vm11, %v669_v36 }
 0x696   :  { %676 = vsyncpa [#allocation3], 1 }
 0x697   :  { %677 = vsyncpa [#allocation5], 1 }

</bundles_post_ra>
